<compile_context>
chip_gen: v5e
topology: v5e:2x2
jax: 0.10.0
libtpu: 0.0.40
codegen_flags: <defaults>
</compile_context>

<pallas_src>
import functools

import jax
import jax.numpy as jnp
from jax.experimental import pallas as pl
from jax.experimental.pallas import tpu as pltpu


def _round_up(x, m):
    return ((x + m - 1) // m) * m


def _focal_kernel(*refs, gamma, s_len, bs, tiles_per_group, has_alpha):
    """One (1, C, bs) logits tile; accumulates a (1, bs) partial-loss row."""
    if has_alpha:
        x_ref, t_ref, a_ref, o_ref = refs
    else:
        x_ref, t_ref, o_ref = refs

    gi = pl.program_id(1)
    si = pl.program_id(2)

    @pl.when(si == 0)
    def _init():
        o_ref[...] = jnp.zeros_like(o_ref)

    x = x_ref[0].astype(jnp.float32)          # (C, bs) logits (bf16 in -> f32 math)
    t = t_ref[0]                              # (1, bs) int32 class ids

    # log_softmax over the class (sublane) axis == F.log_softmax(input, dim=1)
    x_max = jnp.max(x, axis=0, keepdims=True)                  # (1, bs)
    shifted = x - x_max                                        # (C, bs)
    sum_e = jnp.sum(jnp.exp(shifted), axis=0, keepdims=True)   # (1, bs)

    # One-hot gather along classes (bool select, no float one-hot materialised).
    cls = jax.lax.broadcasted_iota(jnp.int32, x.shape, 0)
    onehot = cls == t                                          # (C, bs) bool

    shifted_t = jnp.sum(jnp.where(onehot, shifted, 0.0), axis=0, keepdims=True)
    logpt = shifted_t - jnp.log(sum_e)                         # (1, bs)
    # pt = exp(logpt) on the small row (EUP slot); replaces sum(e*onehot)/sum_e.
    pt = jnp.exp(logpt)

    if has_alpha:
        at = jnp.sum(jnp.where(onehot, a_ref[...], 0.0), axis=0, keepdims=True)
        logpt = logpt * at                                     # alpha[target]

    # Focal weight, specialised at trace time on the Python gamma value.
    g = float(gamma)
    if g == 0.0:
        loss = -logpt
    elif g.is_integer() and 0 < g <= 8:
        loss = -((1.0 - pt) ** int(g)) * logpt        # integer_pow -> plain VPU muls
    else:
        loss = -(jnp.maximum(1.0 - pt, 0.0) ** g) * logpt   # clamp: no NaN if pt>1 rounds

    # Ragged-tail handling: only tiles whose lane range reaches past s_len pay
    # the iota + select.  Index-clamped duplicate tiles (uneven group split)
    # have tile_idx*bs >= s_len and are therefore fully masked to zero too.
    tile_idx = gi * tiles_per_group + si
    is_tail = (tile_idx + 1) * bs > s_len

    @pl.when(jnp.logical_not(is_tail))
    def _acc_interior():
        o_ref[...] += loss[None]                      # VPU add only, no mask ops

    @pl.when(is_tail)
    def _acc_tail():
        col = tile_idx * bs + jax.lax.broadcasted_iota(jnp.int32, loss.shape, 1)
        o_ref[...] += jnp.where(col < s_len, loss, 0.0)[None]


def focal_loss(logits, target, gamma=0.0, alpha=None, size_average=True,
               block_spatial=None):
    """Pallas implementation of FocalLoss.forward(input=logits, target)."""
    # ---- bring logits to (N, C, S): a free reshape for NCHW inputs; a
    # ---- transpose only for the rare already-flattened (M, C) case.
    if logits.ndim > 2:
        n, c = logits.shape[0], logits.shape[1]
        x3 = logits.reshape(n, c, -1)                    # (N, C, S), no data movement
    else:
        c = logits.shape[1]
        x3 = jnp.transpose(logits, (1, 0))[None]         # (1, C, M) - minor path
        n = 1
    s_len = x3.shape[2]
    m_total = n * s_len

    # Targets: reshape is free; cast only when the dtype actually differs.
    # TODO(synk): accept int8/int16 class ids natively (cast the (1, bs) row
    # in-kernel) to shave target HBM traffic further.
    t3 = target.reshape(n, 1, s_len)
    if t3.dtype != jnp.int32:
        t3 = t3.astype(jnp.int32)

    # ---- alpha handling as in FocalLoss.__init__ ----
    has_alpha = alpha is not None
    if has_alpha:
        if isinstance(alpha, (float, int)):
            alpha_vec = jnp.array([float(alpha), 1.0 - float(alpha)], jnp.float32)
        else:
            alpha_vec = jnp.asarray(alpha, jnp.float32).reshape(-1)
        if alpha_vec.shape[0] < c:
            # PyTorch's alpha.gather(0, target) would fail out-of-range here too.
            raise ValueError(f"alpha has {alpha_vec.shape[0]} entries but C={c}")
        a_col = alpha_vec[:c].reshape(c, 1)              # classes on sublanes

    # ---- pick a lane-dense spatial tile (~2 MiB of input per grid step) ----
    x_item = jnp.dtype(logits.dtype).itemsize
    lane_bytes = c * x_item + 4                          # logits + int32 target per lane
    if block_spatial is None:
        budget = 2 * 1024 * 1024
        bs = budget // lane_bytes
        bs = max(512, min(65536, (bs // 128) * 128))
    else:
        bs = _round_up(int(block_spatial), 128)
    bs = min(bs, _round_up(s_len, 128))

    # Two "parallel" spatial groups when there is enough work, so a
    # multi-TensorCore part can split even at batch 1.
    n_tiles = -(-s_len // bs)
    n_groups = 2 if n_tiles >= 2 else 1
    tiles_per_group = -(-n_tiles // n_groups)
    last_tile = n_tiles - 1

    # Clamped spatial index: uneven group splits re-read the last tile; the
    # kernel's column mask zeroes those duplicated contributions exactly.
    def x_map(ni, gi, si):
        return (ni, 0, jnp.minimum(gi * tiles_per_group + si, last_tile))

    def t_map(ni, gi, si):
        return (ni, 0, jnp.minimum(gi * tiles_per_group + si, last_tile))

    def o_map(ni, gi, si):
        return (ni * n_groups + gi, 0, 0)

    in_specs = [pl.BlockSpec((1, c, bs), x_map),
                pl.BlockSpec((1, 1, bs), t_map)]
    args = [x3, t3]
    if has_alpha:
        in_specs.append(pl.BlockSpec((c, 1), lambda ni, gi, si: (0, 0)))
        args.append(a_col)

    # VMEM budget: generation-aware; <= 32 MiB and at most half the reported
    # per-core VMEM capacity (v7x has only 64 MiB -> keep compiler headroom).
    try:
        vmem_cap = int(pltpu.get_tpu_info().vmem_capacity_bytes)
    except Exception:  # conservative fallback if the query is unavailable
        vmem_cap = 64 * 1024 * 1024
    vmem_limit = int(min(32 * 1024 * 1024, vmem_cap // 2))

    kernel = functools.partial(
        _focal_kernel, gamma=float(gamma), s_len=s_len, bs=bs,
        tiles_per_group=tiles_per_group, has_alpha=has_alpha)

    # TODO(synk): on v7x, if profiling shows a single busy TensorCore, switch
    # the (batch, group) axes to pltpu.CORE_PARALLEL (or pl.core_map); and
    # optionally offload the class-axis sums to the idle MXU (measure first).
    partials = pl.pallas_call(
        kernel,
        out_shape=jax.ShapeDtypeStruct((n * n_groups, 1, bs), jnp.float32),
        grid_spec=pltpu.PrefetchScalarGridSpec(
            num_scalar_prefetch=0,
            grid=(n, n_groups, tiles_per_group),
            in_specs=in_specs,
            out_specs=pl.BlockSpec((1, 1, bs), o_map),
        ),
        compiler_params=pltpu.CompilerParams(
            dimension_semantics=("parallel", "parallel", "arbitrary"),
            vmem_limit_bytes=vmem_limit),
    )(*args)

    total = jnp.sum(partials)                 # tiny (n*groups, 1, bs) final reduce
    return total / m_total if size_average else total


def _focal_loss_ref(logits, target, gamma, alpha, size_average):
    """Pure-JAX reference mirroring the PyTorch forward exactly."""
    if logits.ndim > 2:
        n, c = logits.shape[0], logits.shape[1]
        x = logits.reshape(n, c, -1)
        x = jnp.transpose(x, (0, 2, 1)).reshape(-1, c)
    else:
        x = logits
        c = x.shape[1]
    t = target.reshape(-1).astype(jnp.int32)
    logp = jax.nn.log_softmax(x, axis=1)
    logpt = jnp.take_along_axis(logp, t[:, None], axis=1)[:, 0]
    pt = jnp.exp(logpt)
    if alpha is not None:
        if isinstance(alpha, (float, int)):
            avec = jnp.array([float(alpha), 1.0 - float(alpha)], jnp.float32)
        else:
            avec = jnp.asarray(alpha, jnp.float32)
        logpt = logpt * avec[t]
    loss = -((1.0 - pt) ** gamma) * logpt
    return loss.mean() if size_average else loss.sum()


def _assert_close(got, want, tol=1e-4):
    got = float(got)
    want = float(want)
    assert abs(got - want) <= tol * max(1.0, abs(want)), (got, want)


if __name__ == "__main__":
    key = jax.random.PRNGKey(0)
    k_logits, k_target, k_l2, k_t2 = jax.random.split(key, 4)

    N, C, H, W = 2, 4, 16, 16
    logits = jax.random.normal(k_logits, (N, C, H, W), dtype=jnp.float32)
    target = jax.random.randint(k_target, (N, H, W), 0, C, dtype=jnp.int32)

    cases = [
        dict(gamma=0.0, alpha=None, size_average=True),              # module defaults
        dict(gamma=2.0, alpha=None, size_average=True),              # no-alpha fast path
        dict(gamma=2.0, alpha=[0.1, 0.2, 0.3, 0.4], size_average=True),
        dict(gamma=1.5, alpha=[0.25, 0.25, 0.25, 0.25], size_average=False),
    ]
    for cfg in cases:
        out = jax.block_until_ready(focal_loss(logits, target, **cfg))
        ref = _focal_loss_ref(logits, target, cfg["gamma"], cfg["alpha"],
                              cfg["size_average"])
        _assert_close(out, ref)

    # bf16 logits fed straight in (kernel upcasts per-tile; halves HBM traffic)
    logits_bf16 = logits.astype(jnp.bfloat16)
    out_bf = jax.block_until_ready(focal_loss(logits_bf16, target, gamma=2.0))
    ref_bf = _focal_loss_ref(logits_bf16.astype(jnp.float32), target, 2.0, None, True)
    _assert_close(out_bf, ref_bf)

    # already-flattened (M, C) input path (M=8 << 128-lane tile: ragged mask)
    logits2 = jax.random.normal(k_l2, (8, C), dtype=jnp.float32)
    target2 = jax.random.randint(k_t2, (8,), 0, C, dtype=jnp.int32)
    out2 = jax.block_until_ready(
        focal_loss(logits2, target2, gamma=2.0, alpha=[0.1, 0.2, 0.3, 0.4]))
    ref2 = _focal_loss_ref(logits2, target2, 2.0, [0.1, 0.2, 0.3, 0.4], True)
    _assert_close(out2, ref2)

    # Ragged spatial tail + multi-tile grid: S = 18*20 = 360 over 128-wide
    # tiles -> 3 tiles, 2 uneven groups (exercises the clamp + mask path).
    N3, C3, H3, W3 = 2, 3, 18, 20
    logits3 = jax.random.normal(k_l2, (N3, C3, H3, W3), dtype=jnp.float32)
    target3 = jax.random.randint(k_t2, (N3, H3, W3), 0, C3, dtype=jnp.int32)
    out3 = jax.block_until_ready(
        focal_loss(logits3, target3, gamma=2.0, block_spatial=128))
    ref3 = _focal_loss_ref(logits3, target3, 2.0, None, True)
    _assert_close(out3, ref3)

    print("KERNEL_OK")
</pallas_src>

<mosaic_0001>
module attributes {stable_mosaic.version = 11 : i64} {
  func.func @_focal_kernel(%arg0: i32, %arg1: i32, %arg2: i32, %arg3: memref<1x4x256xf32, #tpu.memory_space<vmem>>, %arg4: memref<1x1x256xi32, #tpu.memory_space<vmem>>, %arg5: memref<1x1x256xf32, #tpu.memory_space<vmem>>) attributes {dimension_semantics = [#tpu.dimension_semantics<parallel>, #tpu.dimension_semantics<parallel>, #tpu.dimension_semantics<arbitrary>], iteration_bounds = array<i64: 2, 1, 1>, scalar_prefetch = 0 : i64, scratch_operands = 0 : i64, tpu.core_type = #tpu.core_type<tc>, window_params = [{transform_indices = @transform_0, window_bounds = array<i64: 1, 4, 256>}, {transform_indices = @transform_1, window_bounds = array<i64: 1, 1, 256>}, {transform_indices = @transform_2, window_bounds = array<i64: 1, 1, 256>}]} {
    %c0_i32 = arith.constant 0 : i32
    %0 = arith.cmpi eq, %arg2, %c0_i32 : i32
    %1 = arith.extui %0 : i1 to i32
    %c0_i32_0 = arith.constant 0 : i32
    %2 = arith.cmpi ne, %1, %c0_i32_0 : i32
    scf.if %2 {
      %cst_14 = arith.constant 0.000000e+00 : f32
      %35 = vector.broadcast %cst_14 : f32 to vector<1x1x256xf32>
      %c0_15 = arith.constant 0 : index
      %c0_16 = arith.constant 0 : index
      %c0_17 = arith.constant 0 : index
      %36 = vector.load %arg5[%c0_15, %c0_16, %c0_17] : memref<1x1x256xf32, #tpu.memory_space<vmem>>, vector<1x1x256xf32>
      tpu.vector_store %arg5[%c0_15, %c0_16, %c0_17], %35 {strides = array<i32>} : memref<1x1x256xf32, #tpu.memory_space<vmem>>, vector<1x1x256xf32>,
    } else {
    }
    %c0 = arith.constant 0 : index
    %c0_1 = arith.constant 0 : index
    %c0_2 = arith.constant 0 : index
    %3 = vector.load %arg3[%c0, %c0_1, %c0_2] : memref<1x4x256xf32, #tpu.memory_space<vmem>>, vector<1x4x256xf32>
    %4 = vector.shape_cast %3 : vector<1x4x256xf32> to vector<4x256xf32>
    %c0_3 = arith.constant 0 : index
    %c0_4 = arith.constant 0 : index
    %c0_5 = arith.constant 0 : index
    %5 = vector.load %arg4[%c0_3, %c0_4, %c0_5] : memref<1x1x256xi32, #tpu.memory_space<vmem>>, vector<1x1x256xi32>
    %6 = vector.shape_cast %5 : vector<1x1x256xi32> to vector<1x256xi32>
    %cst = arith.constant dense<0xFF800000> : vector<256xf32>
    %7 = vector.multi_reduction <maximumf>, %4, %cst [0] : vector<4x256xf32> to vector<256xf32>
    %8 = vector.shape_cast %7 : vector<256xf32> to vector<1x256xf32>
    %9 = vector.broadcast %8 : vector<1x256xf32> to vector<4x256xf32>
    %10 = arith.subf %4, %9 : vector<4x256xf32>
    %11 = math.exp %10 : vector<4x256xf32>
    %cst_6 = arith.constant dense<0.000000e+00> : vector<256xf32>
    %12 = vector.multi_reduction <add>, %11, %cst_6 [0] : vector<4x256xf32> to vector<256xf32>
    %13 = vector.shape_cast %12 : vector<256xf32> to vector<1x256xf32>
    %14 = tpu.iota {dimensions = array<i32: 0>} : vector<4x256xi32>
    %15 = vector.broadcast %6 : vector<1x256xi32> to vector<4x256xi32>
    %16 = arith.cmpi eq, %14, %15 : vector<4x256xi32>
    %cst_7 = arith.constant 0.000000e+00 : f32
    %17 = vector.broadcast %cst_7 : f32 to vector<4x256xf32>
    %18 = arith.select %16, %10, %17 : vector<4x256xi1>, vector<4x256xf32>
    %cst_8 = arith.constant dense<0.000000e+00> : vector<256xf32>
    %19 = vector.multi_reduction <add>, %18, %cst_8 [0] : vector<4x256xf32> to vector<256xf32>
    %20 = vector.shape_cast %19 : vector<256xf32> to vector<1x256xf32>
    %21 = math.log %13 : vector<1x256xf32>
    %22 = arith.subf %20, %21 : vector<1x256xf32>
    %cst_9 = arith.constant 0.000000e+00 : f32
    %23 = vector.broadcast %cst_9 : f32 to vector<1x256xf32>
    %24 = arith.subf %23, %22 : vector<1x256xf32>
    %c1_i32 = arith.constant 1 : i32
    %25 = arith.muli %arg1, %c1_i32 : i32
    %26 = arith.addi %25, %arg2 : i32
    %c1_i32_10 = arith.constant 1 : i32
    %27 = arith.addi %26, %c1_i32_10 : i32
    %c256_i32 = arith.constant 256 : i32
    %28 = arith.muli %27, %c256_i32 : i32
    %c256_i32_11 = arith.constant 256 : i32
    %29 = arith.cmpi sgt, %28, %c256_i32_11 : i32
    %true = arith.constant true
    %30 = arith.xori %29, %true : i1
    %31 = arith.extui %30 : i1 to i32
    %c0_i32_12 = arith.constant 0 : i32
    %32 = arith.cmpi ne, %31, %c0_i32_12 : i32
    scf.if %32 {
      %c0_14 = arith.constant 0 : index
      %c0_15 = arith.constant 0 : index
      %c0_16 = arith.constant 0 : index
      %35 = vector.load %arg5[%c0_14, %c0_15, %c0_16] : memref<1x1x256xf32, #tpu.memory_space<vmem>>, vector<1x1x256xf32>
      %36 = vector.shape_cast %24 : vector<1x256xf32> to vector<1x1x256xf32>
      %37 = arith.addf %35, %36 : vector<1x1x256xf32>
      %c0_17 = arith.constant 0 : index
      %c0_18 = arith.constant 0 : index
      %c0_19 = arith.constant 0 : index
      %38 = vector.load %arg5[%c0_17, %c0_18, %c0_19] : memref<1x1x256xf32, #tpu.memory_space<vmem>>, vector<1x1x256xf32>
      tpu.vector_store %arg5[%c0_17, %c0_18, %c0_19], %37 {strides = array<i32>} : memref<1x1x256xf32, #tpu.memory_space<vmem>>, vector<1x1x256xf32>,
    } else {
    }
    %33 = arith.extui %29 : i1 to i32
    %c0_i32_13 = arith.constant 0 : i32
    %34 = arith.cmpi ne, %33, %c0_i32_13 : i32
    scf.if %34 {
      %c256_i32_14 = arith.constant 256 : i32
      %35 = arith.muli %26, %c256_i32_14 : i32
      %36 = tpu.iota {dimensions = array<i32: 1>} : vector<1x256xi32>
      %37 = vector.broadcast %35 : i32 to vector<1x256xi32>
      %38 = arith.addi %37, %36 : vector<1x256xi32>
      %c0_15 = arith.constant 0 : index
      %c0_16 = arith.constant 0 : index
      %c0_17 = arith.constant 0 : index
      %39 = vector.load %arg5[%c0_15, %c0_16, %c0_17] : memref<1x1x256xf32, #tpu.memory_space<vmem>>, vector<1x1x256xf32>
      %c256_i32_18 = arith.constant 256 : i32
      %40 = vector.broadcast %c256_i32_18 : i32 to vector<1x256xi32>
      %41 = arith.cmpi slt, %38, %40 : vector<1x256xi32>
      %cst_19 = arith.constant 0.000000e+00 : f32
      %42 = vector.broadcast %cst_19 : f32 to vector<1x256xf32>
      %43 = arith.select %41, %24, %42 : vector<1x256xi1>, vector<1x256xf32>
      %44 = vector.shape_cast %43 : vector<1x256xf32> to vector<1x1x256xf32>
      %45 = arith.addf %39, %44 : vector<1x1x256xf32>
      %c0_20 = arith.constant 0 : index
      %c0_21 = arith.constant 0 : index
      %c0_22 = arith.constant 0 : index
      %46 = vector.load %arg5[%c0_20, %c0_21, %c0_22] : memref<1x1x256xf32, #tpu.memory_space<vmem>>, vector<1x1x256xf32>
      tpu.vector_store %arg5[%c0_20, %c0_21, %c0_22], %45 {strides = array<i32>} : memref<1x1x256xf32, #tpu.memory_space<vmem>>, vector<1x1x256xf32>,
    } else {
    }
    return
  }
  func.func @transform_0(%arg0: i32, %arg1: i32, %arg2: i32) -> (i32, i32, i32) {
    %c1_i32 = arith.constant 1 : i32
    %0 = arith.muli %arg1, %c1_i32 : i32
    %1 = arith.addi %0, %arg2 : i32
    %c0_i32 = arith.constant 0 : i32
    %2 = arith.minsi %1, %c0_i32 : i32
    %c0_i32_0 = arith.constant 0 : i32
    %c0_i32_1 = arith.constant 0 : i32
    return %arg0, %c0_i32_0, %2 : i32, i32, i32
  }
  func.func @transform_1(%arg0: i32, %arg1: i32, %arg2: i32) -> (i32, i32, i32) {
    %c1_i32 = arith.constant 1 : i32
    %0 = arith.muli %arg1, %c1_i32 : i32
    %1 = arith.addi %0, %arg2 : i32
    %c0_i32 = arith.constant 0 : i32
    %2 = arith.minsi %1, %c0_i32 : i32
    %c0_i32_0 = arith.constant 0 : i32
    %c0_i32_1 = arith.constant 0 : i32
    return %arg0, %c0_i32_0, %2 : i32, i32, i32
  }
  func.func @transform_2(%arg0: i32, %arg1: i32, %arg2: i32) -> (i32, i32, i32) {
    %c1_i32 = arith.constant 1 : i32
    %0 = arith.muli %arg0, %c1_i32 : i32
    %1 = arith.addi %0, %arg1 : i32
    %c0_i32 = arith.constant 0 : i32
    %c0_i32_0 = arith.constant 0 : i32
    %c0_i32_1 = arith.constant 0 : i32
    return %1, %c0_i32, %c0_i32_0 : i32, i32, i32
  }
}

</mosaic_0001>

<bundles_post_ra>
// kernel: tpu_custom_call.1
= control target key start
LH: loop header
LB: loop body
LE: loop exit
PB: predicated region body
PF: predicated region fallthrough
CT: control target
= control target key end

     0   :  { %7 = vsyncpa [#allocation3], 0  ;;  %s946_s0 = inlined_call_operand.hbm [shape: f32[2,4,256], index: 0, kind: input, shape index: {}]   ;;  %s947_s1 = inlined_call_operand.hbm [shape: s32[2,1,256], index: 1, kind: input, shape index: {}]   ;;  %s948_s2 = inlined_call_operand.hbm [shape: f32[2,1,256], index: 2, kind: output, shape index: {}]  }
   0x1   :  { %9 = vsyncpa [#allocation3 + $0x1], 0 }
   0x2   :  { %10 = vsyncpa [#allocation6], 0 }
   0x3   :  { %12 = vsyncpa [#allocation6 + $0x1], 0 }
   0x4   :  { %13 = vsyncpa [#allocation4], 0 }
   0x5   :  { %15 = vsyncpa [#allocation4 + $0x1], 0  ;;  %s784_s9 = smov 0   ;;  %s786_s10 = smov 0  }
   0x6   :  { %s788_s11 = smov 0   ;;  %s790_s12 = smov 0  }
   0x7   :  { %s792_s13 = smov 0   ;;  %s794_s14 = smov 0  }
   0x8 LB: > { %s528_s15 = sadd.s32 4294967295, %s766_s14   ;;  %s529_s16 = sadd.s32 4294967294, %s766_s14   ;;  %s766_s14 = sphi %s794_s14, %s21_s14   ;;  %s762_s13 = sphi %s792_s13, %s960_s13   ;;  %s758_s12 = sphi %s790_s12, %s959_s12   ;;  %s754_s11 = sphi %s788_s11, %s958_s11   ;;  %s750_s10 = sphi %s786_s10, %s957_s10   ;;  %s746_s9 = sphi %s784_s9, %s956_s9  }
   0x9   : > { %s40_s17 = sadd.s32 1, %s762_s13  ;;  %s55_s18 = sadd.s32 1, %s754_s11 }
   0xa   : > { %p42_p0 = scmp.ge.s32.totalorder %s40_s17, 2  ;;  %p62_p1 = scmp.ne.s32.totalorder %s754_s11, %s750_s10 }
   0xb   : > { %p63_p2 = scmp.eq.s32.totalorder %s766_s14, 0  ;;  %p68_p3 = scmp.ne.s32.totalorder %s750_s10, %s746_s9 }
   0xc   : > { %s962_s17 = smov (%p42_p0, %s40_s17), 0  ;;  %p69_p5 = scmp.eq.s32.totalorder %s528_s15, 0 }
   0xd   : > { %p825_p4 = por %p63_p2, %p62_p1  ;;  %s50_s20 = ssub.s32 %s762_s13, %s962_s17 }
   0xe   : > { %p128_p6 = scmp.eq.s32.totalorder %s528_s15, 1  ;;  %p53_p7 = scmp.eq.s32.totalorder %s50_s20, 0 }
   0xf   : > { %p831_p8 = por %p69_p5, %p68_p3  ;;  %p134_p10 = scmp.eq.s32.totalorder %s529_s16, 1 }
  0x10   : > { %p835_p9 = por %p128_p6, %p62_p1  ;;  %p531_p12 = scmp.ge.s32.totalorder %s766_s14, 2 }
  0x11   : > { %s840_s23 = scalar_select %p53_p7, %s754_s11, %s55_s18  }
  0x12   : > { %p842_p11 = por %p134_p10, %p68_p3  ;;  %p563_p13 = scmp.lt.s32.totalorder %s766_s14, 2 }
  0x13   : > { %s154_s25 = sand.u32 1, %s754_s11   ;;  %s545_s27 = sshll.u32 %s762_s13, 3 }
  0x14   : > { %s532_s26 = sshll.u32 %s154_s25, 3  ;;  %s168_s30 = scalar_lea.hbm %s946_s0, %s545_s27 }
  0x15   : > { %s158_s3 = scalar_lea.vmem [#allocation2], %s532_s26  ;;  %s170_s5 = sshll.u32 %s168_s30, 4  ;;  %s171_s5 = int_to_ptr.hbm [resolvable:$true] %s170_s5 }
  0x16   : > { %s172_s4 = sshll.u32 %s158_s3, 4  ;;  %p855_p0 = pnand %p563_p13, %p825_p4  ;;  %s173_s4 = int_to_ptr.vmem [resolvable:$true] %s172_s4 }
  0x17   : > { %p537_p1 = scmp.ge.s32.totalorder %s766_s14, 1  ;;  %p201_p2 = scmp.lt.s32.totalorder %s766_s14, 3 }
  0x18   : > { %s155_s7 = scalar_lea.sflag [#allocation3], %s154_s25  ;;  %s535_s8 = sshll.u32 %s154_s25, 1 }
  0x19   : > { %555 = dma.hbm_to_vmem [thread:$0]  (!%p855_p0), %s171_s5, 128, %s173_s4, %s155_s7  }
  0x1a   : > { %p202_p3 = pnand %p537_p1, %p201_p2  ;;  %s536_s15 = sshll.u32 %s762_s13, 1 }
  0x1b   : > { %s192_s20 = scalar_lea.hbm %s947_s1, %s536_s15  ;;  %s183_s26 = scalar_lea.vmem [#allocation5], %s535_s8 }
  0x1c   : > { %s196_s19 = sshll.u32 %s183_s26, 4  ;;  %s194_s27 = sshll.u32 %s192_s20, 4  ;;  %s197_s19 = int_to_ptr.vmem [resolvable:$true] %s196_s19  ;;  %s195_s27 = int_to_ptr.hbm [resolvable:$true] %s194_s27 }
  0x1d   : > { %s180_s28 = scalar_lea.sflag [#allocation6], %s154_s25  ;;  %205 = sbr.rel (%p202_p3) target bundleno = 116 (0x74), region = 28 }
  0x1e   : > { %558 = dma.hbm_to_vmem [thread:$0]  (!%p855_p0), %s195_s27, 32, %s197_s19, %s180_s28  }
  0x1f   : > { %s870_s29 = sand.u32 (!%p202_p3), 1, %s750_s10  }
  0x20   : > { %s538_s30 = sshll.u32 (!%p202_p3), %s870_s29, 3  ;;  %s208_s3 = scalar_lea.sflag (!%p202_p3), [#allocation3], %s870_s29 }
  0x21   : > { %s211_s4 = scalar_lea.vmem (!%p202_p3), [#allocation2], %s538_s30 }
  0x22   : > { %733 = dma.done.wait (%p831_p8), %s208_s3, 128  }
  0x23   : > { %735 = vsyncadd (%p831_p8), %s208_s3, 4294967168  ;;  %s539_s25 = sshll.u32 %s870_s29, 1  ;;  %s218_s5 = scalar_lea.sflag [#allocation6], %s870_s29 }
  0x24   : > { %s880_s6 = scalar_lea.vmem [#allocation5], %s539_s25 }
  0x25   : > { %737 = dma.done.wait (%p831_p8), %s218_s5, 32  }
  0x26   : > { %739 = vsyncadd (%p831_p8), %s218_s5, 4294967264  ;;  %v266_v0 = vld [vmem:[%s211_s4] sm:$0xff]  ;;  %vm274_vm0 = vcmask 1043456   ;;  %v261_v18 = vlaneseq  ;;  %s893_s21 = scalar_lea.vmem [#allocation7], %s539_s25  ;;  %v768_v22 = vmov 0.0   ;;  %s542_s7 = sshll.u32 %s758_s12, 1 }
  0x27   : > { %269 = vst [vmem:[#allocation1] ss:$2 sm:$0xff] %v266_v0  ;;  %v267_v25 = vld [vmem:[%s880_s6] sm:$0x3]  ;;  %s413_s16 = scalar_lea.hbm %s948_s2, %s542_s7  ;;  %vm365_vm4 = vcmask 1040384   ;;  %s415_s18 = sshll.u32 %s893_s21, 4  ;;  %s416_s18 = int_to_ptr.vmem [resolvable:$true] %s415_s18 }
  0x28   : > { %vm889_vm1 = vcmp.lt.s32.totalorder %v261_v18, 256  ;;  %v318_v30 = vshrl.u32 %v261_v18, 7  ;;  %v319_v33 = vperm.slane %v267_v25, 0  ;;  %v320_v34 = vperm.slane %v267_v25, 1  ;;  %s417_s20 = sshll.u32 %s413_s16, 4  ;;  %s402_s12 = scalar_lea.sflag [#allocation4], %s870_s29  ;;  %s418_s20 = int_to_ptr.hbm [resolvable:$true] %s417_s20 }
  0x29   : > { %265 = vst.msk [vmem:[%s893_s21] sm:$0x3] %vm889_vm1, %v768_v22  ;;  %s694_s26 = sshra.s32 %s418_s20, 4  ;;  %s700_s30 = scalar_lea.hbm %s948_s2, 4  ;;  %s695_s26 = int_to_ptr.hbm [resolvable:$true] %s694_s26 }
  0x2a   : > { %vm321_vm2 = vcmp.eq.s32.totalorder %v318_v30, %v319_v33  ;;  %vm322_vm3 = vcmp.eq.s32.totalorder %v318_v30, %v320_v34  ;;  %s696_s19 = scalar_lea.hbm %s695_s26, 2  ;;  %p701_p7 = scmp.lt.s32.totalorder %s695_s26, %s948_s2 }
  0x2b   : > { %p697_p4 = scmp.ne.s32.totalorder %s695_s26, %s696_s19  ;;  %p702_p8 = scmp.lt.s32.totalorder %s700_s30, %s696_s19 }
  0x2d   : > { %p698_p5 = pnand %p697_p4, %p835_p9  ;;  %p703_p10 = por %p702_p8, %p701_p7 }
  0x2e   : > { %v270_v1 = vld.sshfl [vmem:[#allocation1] sm:$0xff pattern:$0x75316420]  ;;  %v271_v2 = vld.sshfl [vmem:[#allocation1 + $0x8] sm:$0xff pattern:$0x75316420] }
  0x2f   : > { %v275_v3 = vsel %vm274_vm0, %v270_v1, -inf  ;;  %v282_v4 = vsel %vm274_vm0, %v271_v2, -inf  ;;  %p699_p6 = pneg %p698_p5 }
  0x30   : > { %v276_v5 = vrot.slane %v275_v3, 4  ;;  %v283_v6 = vrot.slane %v282_v4, 4 }
  0x31   : > { %p704_p13 = pnand %p703_p10, %p699_p6 }
  0x32   : > { %v277_v7 = vmax.f32 %v275_v3, %v276_v5  ;;  %v284_v8 = vmax.f32 %v282_v4, %v283_v6 }
  0x34   : > { %v278_v9 = vrot.slane %v277_v7, 2  ;;  %v285_v10 = vrot.slane %v284_v8, 2 }
  0x36   : > { %v279_v11 = vmax.f32 %v277_v7, %v278_v9  ;;  %v286_v12 = vmax.f32 %v284_v8, %v285_v10  ;;  %v361_v7 = vld [vmem:[%s893_s21] sm:$0x3] }
  0x38   : > { %v280_v13 = vrot.slane %v279_v11, 1  ;;  %v287_v14 = vrot.slane %v286_v12, 1 }
  0x3a   : > { %v288_v15 = vmax.f32 %v286_v12, %v287_v14  ;;  %v281_v16 = vmax.f32 %v279_v11, %v280_v13 }
  0x3c   : > { %v291_v17 = vrot.slane %v288_v15, 4 }
  0x3e   : > { %v292_v19 = vsel %vm274_vm0, %v281_v16, %v291_v17 }
  0x3f   : > { %v294_v20 = vsub.f32 %v266_v0, %v292_v19 }
  0x41   : > { %v295_v23 = vmul.f32 1.442695, %v294_v20 }
  0x43   : > { %614 = vpow2.f32 %v295_v23 }
  0x49   : > { %v615_v24 = vpop.eup %614 }
  0x4a   : > { %298 = vst [vmem:[#allocation1] ss:$2 sm:$0xff] %v615_v24 }
  0x51   : > { %v299_v26 = vld.sshfl [vmem:[#allocation1] sm:$0xff pattern:$0x75316420]  ;;  %v300_v27 = vld.sshfl [vmem:[#allocation1 + $0x8] sm:$0xff pattern:$0x75316420] }
  0x52   : > { %v303_v28 = vsel %vm274_vm0, %v299_v26, 0.0  ;;  %v310_v29 = vsel %vm274_vm0, %v300_v27, 0.0  ;;  %324 = vst [vmem:[#allocation1] ss:$2 sm:$0xff] %v294_v20 }
  0x53   : > { %v304_v31 = vrot.slane %v303_v28, 4  ;;  %v311_v32 = vrot.slane %v310_v29, 4 }
  0x55   : > { %v305_v35 = vadd.f32 %v304_v31, %v303_v28  ;;  %v312_v36 = vadd.f32 %v311_v32, %v310_v29 }
  0x57   : > { %v306_v37 = vrot.slane %v305_v35, 2  ;;  %v313_v38 = vrot.slane %v312_v36, 2 }
  0x59   : > { %v307_v39 = vadd.f32 %v306_v37, %v305_v35  ;;  %v314_v40 = vadd.f32 %v313_v38, %v312_v36  ;;  %v325_v41 = vld.sshfl [vmem:[#allocation1] sm:$0xff pattern:$0x75316420]  ;;  %v326_v42 = vld.sshfl [vmem:[#allocation1 + $0x8] sm:$0xff pattern:$0x75316420] }
  0x5a   : > { %v329_v43 = vsel %vm321_vm2, %v325_v41, 0.0  ;;  %v330_v44 = vsel %vm322_vm3, %v326_v42, 0.0 }
  0x5b   : > { %v308_v45 = vrot.slane %v307_v39, 1  ;;  %v315_v46 = vrot.slane %v314_v40, 1  ;;  %v331_v47 = vsel %vm274_vm0, %v329_v43, 0.0  ;;  %v338_v48 = vsel %vm274_vm0, %v330_v44, 0.0 }
  0x5c   : > { %v332_v49 = vrot.slane %v331_v47, 4  ;;  %v339_v50 = vrot.slane %v338_v48, 4 }
  0x5d   : > { %v309_v51 = vadd.f32 %v308_v45, %v307_v39  ;;  %v316_v52 = vadd.f32 %v315_v46, %v314_v40 }
  0x5e   : > { %v333_v53 = vadd.f32 %v332_v49, %v331_v47  ;;  %v340_v54 = vadd.f32 %v339_v50, %v338_v48 }
  0x5f   : > { %616 = vlog2.f32 %v316_v52 }
  0x60   : > { %v334_v55 = vrot.slane %v333_v53, 2  ;;  %v341_v56 = vrot.slane %v340_v54, 2  ;;  %618 = vlog2.f32 %v309_v51 }
  0x62   : > { %v335_v57 = vadd.f32 %v334_v55, %v333_v53  ;;  %v342_v58 = vadd.f32 %v341_v56, %v340_v54 }
  0x64   : > { %v336_v59 = vrot.slane %v335_v57, 1  ;;  %v343_v60 = vrot.slane %v342_v58, 1 }
  0x65   : > { %v617_v61 = vpop.eup %616 }
  0x66   : > { %v619_v62 = vpop.eup %618  ;;  %v337_v63 = vadd.f32 %v336_v59, %v335_v57  ;;  %v344_v0 = vadd.f32 %v343_v60, %v342_v58  ;;  %v348_v1 = vmul.f32 0.6931472, %v617_v61 }
  0x67   : > { %v346_v2 = vmul.f32 0.6931472, %v619_v62 }
  0x68   : > { %v350_v3 = vsub.f32 %v344_v0, %v348_v1 }
  0x69   : > { %v349_v4 = vsub.f32 %v337_v63, %v346_v2 }
  0x6a   : > { %v352_v5 = vsub.f32 0.0, %v350_v3 }
  0x6b   : > { %v351_v6 = vsub.f32 0.0, %v349_v4 }
  0x6c   : > { %v364_v8 = vrot.slane %v352_v5, 7 }
  0x6e   : > { %v366_v9 = vsel %vm365_vm4, %v351_v6, %v364_v8 }
  0x6f   : > { %v368_v10 = vadd.f32 %v366_v9, %v361_v7 }
  0x71   : > { %373 = vst.msk [vmem:[%s893_s21] sm:$0x3] %vm889_vm1, %v368_v10 }
  0x72   : > { %707 = shalt.err (!%p704_p13)
}
  0x73   : > { %550 = dma.vmem_to_hbm [thread:$0]  (%p835_p9), %s416_s18, 32, %s418_s20, %s402_s12  }
  0x74 PF: > { %s429_s29 = sand.u32 1, %s746_s9   ;;  %p560_p0 = pnand %p531_p12, %p842_p11 }
  0x75   : > { %s430_s25 = scalar_lea.sflag [#allocation4], %s429_s29 }
  0x76   : > { %p561_p1 = pneg %p560_p0 }
  0x78   : > { %741 = dma.done.wait (%p561_p1), %s430_s25, 32  }
  0x79   : > { %743 = vsyncadd (%p561_p1), %s430_s25, 4294967264  ;;  %s21_s14 = sadd.s32 1, %s766_s14   ;;  %s956_s9 = smov %s750_s10 }
  0x7a   : > { %p18_p2 = scmp.ge.s32.totalorder %s21_s14, 4   ;;  %s957_s10 = smov %s754_s11 }
  0x7b   : > { %s958_s11 = smov %s840_s23  ;;  %s959_s12 = smov %s762_s13 }
  0x7c   : > { %s960_s13 = smov %s962_s17  ;;  %20 = sbr.rel (!%p18_p2) target bundleno = 8 (0x8), region = 98 }
  0x81   :  { %436 = vsyncpa [#allocation3], 1 }
  0x82   :  { %438 = vsyncpa [#allocation3 + $0x1], 1 }
  0x83   :  { %439 = vsyncpa [#allocation6], 1 }
  0x84   :  { %441 = vsyncpa [#allocation6 + $0x1], 1 }
  0x85   :  { %442 = vsyncpa [#allocation4], 1 }
  0x86   :  { %444 = vsyncpa [#allocation4 + $0x1], 1 }

</bundles_post_ra>
